<compile_context>
chip_gen: v5e
topology: v5e:2x2
jax: 0.10.0
libtpu: 0.0.40
codegen_flags: <defaults>
</compile_context>

<pallas_src>
import functools

import jax
import jax.numpy as jnp
from jax.experimental import pallas as pl
from jax.experimental.pallas import tpu as pltpu


def _round_up(x, m):
    return ((x + m - 1) // m) * m


# Below this contraction length, unrolled VPU broadcast-FMAs beat an MXU pass
# (sweep 8/16/32 per generation if this ever becomes the bottleneck).
_MXU_MIN_K = 16


def _make_linear_kernel(action_dim):
    """Kernel body specialized on the (static) contraction length."""
    use_mxu = action_dim >= _MXU_MIN_K

    def kernel(x_ref, w_ref, b_ref, o_ref):
        x = x_ref[...].astype(jnp.float32)      # (bt, K)
        w = w_ref[...].astype(jnp.float32)      # (K, N)   VMEM-resident
        b = b_ref[...].astype(jnp.float32)      # (1, N)   VMEM-resident
        if use_mxu:
            acc = jnp.dot(x, w, preferred_element_type=jnp.float32)
        else:
            # Tiny K: a few unrolled VPU broadcast-multiply-adds; the MXU/MRF
            # drain stays off the critical path.
            acc = x[:, 0:1] * w[0:1, :]
            for k in range(1, action_dim):
                acc = acc + x[:, k:k + 1] * w[k:k + 1, :]
        o_ref[...] = (acc + b).astype(o_ref.dtype)   # f32 epilogue (v5e-safe)

    return kernel


def prepare_params(weight, bias):
    """One-time parameter prep (hoisted out of the per-call hot path).

    weight: (latent_dim, action_dim) PyTorch Linear convention.
    Returns (w_t (action_dim, latent_dim), b_r (1, latent_dim)).
    No lane padding: keeping the output last dim == latent_dim avoids writing
    dead lanes to HBM (the dominant byte stream at small K) and removes the
    post-kernel slice.
    """
    w_t = jnp.asarray(weight).T               # (action_dim, latent_dim)
    b_r = jnp.asarray(bias).reshape(1, -1)    # (1, latent_dim)
    return w_t, b_r


def _pick_bt(batch, block_b):
    """Batch tile: multiple of 8 (f32 sublane) or the full batch, sized so the
    grid has >=2 steps whenever the batch allows (v7x 2-TC sharding)."""
    if batch <= 8:
        return batch                           # one block == full dim (always legal)
    half = _round_up((batch + 1) // 2, 8)      # split ~evenly into >=2 blocks
    return max(8, min(block_b, half))


@functools.partial(
    jax.jit, static_argnames=("block_b", "force_pallas", "min_pallas_batch"))
def base_action_forward(action, w_t, b_r, *, block_b=1024, force_pallas=False,
                        min_pallas_batch=256):
    """action: (B, action_dim); w_t: (action_dim, latent_dim); b_r: (1, latent_dim)."""
    B, action_dim = action.shape
    latent_dim = w_t.shape[1]

    # Small-batch fallback: at the module's canonical sizes a plain XLA dot
    # fuses with neighbors and beats a standalone custom call.
    if (not force_pallas) and B < min_pallas_batch:
        y = (action.astype(jnp.float32) @ w_t.astype(jnp.float32)
             + b_r.astype(jnp.float32))
        return y.astype(action.dtype)

    bt = _pick_bt(B, block_b)
    grid = (pl.cdiv(B, bt),)                   # no jnp.pad; Pallas masks the edge block
    kernel = _make_linear_kernel(action_dim)

    x_isz = jnp.dtype(action.dtype).itemsize
    bytes_accessed = (B * action_dim * x_isz                                   # x
                      + action_dim * latent_dim * jnp.dtype(w_t.dtype).itemsize  # w
                      + latent_dim * jnp.dtype(b_r.dtype).itemsize              # b
                      + B * latent_dim * x_isz)                                  # out

    return pl.pallas_call(
        kernel,
        out_shape=jax.ShapeDtypeStruct((B, latent_dim), action.dtype),
        grid=grid,
        in_specs=[
            pl.BlockSpec((bt, action_dim), lambda i: (i, 0)),        # x: tiled rows
            pl.BlockSpec((action_dim, latent_dim), lambda i: (0, 0)),  # w: resident
            pl.BlockSpec((1, latent_dim), lambda i: (0, 0)),           # b: resident
        ],
        out_specs=pl.BlockSpec((bt, latent_dim), lambda i: (i, 0)),  # true-width store
        compiler_params=pltpu.CompilerParams(
            dimension_semantics=("parallel",),   # shard batch axis across TCs (v7x)
        ),
        cost_estimate=pl.CostEstimate(
            flops=2 * B * action_dim * latent_dim,
            transcendentals=0,
            bytes_accessed=bytes_accessed,
        ),
    )(action, w_t, b_r)


if __name__ == "__main__":
    # Module hyperparameters (small action encoder).
    action_dim = 4
    latent_dim = 32
    batch = 8
    action_bounds = (-1.0, 1.0)  # defines action_space; does not affect forward()

    key = jax.random.PRNGKey(0)
    k_x, k_w, k_b, k_x2 = jax.random.split(key, 4)

    # Deterministic synthetic parameters (PyTorch Linear shape convention).
    weight = jax.random.normal(k_w, (latent_dim, action_dim), dtype=jnp.float32) * 0.1
    bias = jax.random.normal(k_b, (latent_dim,), dtype=jnp.float32) * 0.01

    # One-time parameter prep (transpose + reshape) — NOT in the hot path.
    w_t, b_r = prepare_params(weight, bias)

    # Example input actions within bounds.
    action = jnp.clip(
        jax.random.normal(k_x, (batch, action_dim), dtype=jnp.float32),
        action_bounds[0], action_bounds[1])

    # 1) Pallas kernel path (forced, so the custom call is exercised at small B).
    out = base_action_forward(action, w_t, b_r, force_pallas=True)
    out = jax.block_until_ready(out)
    ref = action @ weight.T + bias
    assert out.shape == (batch, latent_dim)
    assert jnp.allclose(out, ref, atol=1e-5), "mismatch vs reference (small batch)"

    # 2) Multi-step grid + masked edge block (B not a multiple of the tile).
    big_batch = 520
    action_big = jnp.clip(
        jax.random.normal(k_x2, (big_batch, action_dim), dtype=jnp.float32),
        action_bounds[0], action_bounds[1])
    out_big = base_action_forward(action_big, w_t, b_r, force_pallas=True)
    out_big = jax.block_until_ready(out_big)
    ref_big = action_big @ weight.T + bias
    assert out_big.shape == (big_batch, latent_dim)
    assert jnp.allclose(out_big, ref_big, atol=1e-5), "mismatch vs reference (big batch)"

    # 3) Small-batch fallback path (plain fused XLA dot).
    out_fb = jax.block_until_ready(base_action_forward(action, w_t, b_r))
    assert jnp.allclose(out_fb, ref, atol=1e-5), "mismatch vs reference (fallback)"

    print("KERNEL_OK")
</pallas_src>

<mosaic_0001>
module attributes {stable_mosaic.version = 11 : i64} {
  func.func @kernel(%arg0: i32, %arg1: memref<8x4xf32, #tpu.memory_space<vmem>>, %arg2: memref<4x32xf32, #tpu.memory_space<vmem>>, %arg3: memref<1x32xf32, #tpu.memory_space<vmem>>, %arg4: memref<8x32xf32, #tpu.memory_space<vmem>>) attributes {dimension_semantics = [#tpu.dimension_semantics<parallel>], iteration_bounds = array<i64: 1>, scalar_prefetch = 0 : i64, scratch_operands = 0 : i64, tpu.core_type = #tpu.core_type<tc>, window_params = [{transform_indices = @transform_0, window_bounds = array<i64: 8, 4>}, {pipeline_mode = #tpu.pipeline_mode<synchronous>, transform_indices = @transform_1, window_bounds = array<i64: 4, 32>}, {pipeline_mode = #tpu.pipeline_mode<synchronous>, transform_indices = @transform_2, window_bounds = array<i64: 1, 32>}, {transform_indices = @transform_3, window_bounds = array<i64: 8, 32>}]} {
    %c0 = arith.constant 0 : index
    %c0_0 = arith.constant 0 : index
    %0 = vector.load %arg1[%c0, %c0_0] : memref<8x4xf32, #tpu.memory_space<vmem>>, vector<8x4xf32>
    %c0_1 = arith.constant 0 : index
    %c0_2 = arith.constant 0 : index
    %1 = vector.load %arg2[%c0_1, %c0_2] : memref<4x32xf32, #tpu.memory_space<vmem>>, vector<4x32xf32>
    %c0_3 = arith.constant 0 : index
    %c0_4 = arith.constant 0 : index
    %2 = vector.load %arg3[%c0_3, %c0_4] : memref<1x32xf32, #tpu.memory_space<vmem>>, vector<1x32xf32>
    %3 = vector.extract_strided_slice %0 {offsets = [0, 0], sizes = [8, 1], strides = [1, 1]} : vector<8x4xf32> to vector<8x1xf32>
    %4 = vector.extract_strided_slice %1 {offsets = [0, 0], sizes = [1, 32], strides = [1, 1]} : vector<4x32xf32> to vector<1x32xf32>
    %5 = vector.broadcast %3 : vector<8x1xf32> to vector<8x32xf32>
    %6 = vector.broadcast %4 : vector<1x32xf32> to vector<8x32xf32>
    %7 = arith.mulf %5, %6 : vector<8x32xf32>
    %8 = vector.extract_strided_slice %0 {offsets = [0, 1], sizes = [8, 1], strides = [1, 1]} : vector<8x4xf32> to vector<8x1xf32>
    %9 = vector.extract_strided_slice %1 {offsets = [1, 0], sizes = [1, 32], strides = [1, 1]} : vector<4x32xf32> to vector<1x32xf32>
    %10 = vector.broadcast %8 : vector<8x1xf32> to vector<8x32xf32>
    %11 = vector.broadcast %9 : vector<1x32xf32> to vector<8x32xf32>
    %12 = arith.mulf %10, %11 : vector<8x32xf32>
    %13 = arith.addf %7, %12 : vector<8x32xf32>
    %14 = vector.extract_strided_slice %0 {offsets = [0, 2], sizes = [8, 1], strides = [1, 1]} : vector<8x4xf32> to vector<8x1xf32>
    %15 = vector.extract_strided_slice %1 {offsets = [2, 0], sizes = [1, 32], strides = [1, 1]} : vector<4x32xf32> to vector<1x32xf32>
    %16 = vector.broadcast %14 : vector<8x1xf32> to vector<8x32xf32>
    %17 = vector.broadcast %15 : vector<1x32xf32> to vector<8x32xf32>
    %18 = arith.mulf %16, %17 : vector<8x32xf32>
    %19 = arith.addf %13, %18 : vector<8x32xf32>
    %20 = vector.extract_strided_slice %0 {offsets = [0, 3], sizes = [8, 1], strides = [1, 1]} : vector<8x4xf32> to vector<8x1xf32>
    %21 = vector.extract_strided_slice %1 {offsets = [3, 0], sizes = [1, 32], strides = [1, 1]} : vector<4x32xf32> to vector<1x32xf32>
    %22 = vector.broadcast %20 : vector<8x1xf32> to vector<8x32xf32>
    %23 = vector.broadcast %21 : vector<1x32xf32> to vector<8x32xf32>
    %24 = arith.mulf %22, %23 : vector<8x32xf32>
    %25 = arith.addf %19, %24 : vector<8x32xf32>
    %26 = vector.broadcast %2 : vector<1x32xf32> to vector<8x32xf32>
    %27 = arith.addf %25, %26 : vector<8x32xf32>
    %c0_5 = arith.constant 0 : index
    %c0_6 = arith.constant 0 : index
    %28 = vector.load %arg4[%c0_5, %c0_6] : memref<8x32xf32, #tpu.memory_space<vmem>>, vector<8x32xf32>
    tpu.vector_store %arg4[%c0_5, %c0_6], %27 {strides = array<i32>} : memref<8x32xf32, #tpu.memory_space<vmem>>, vector<8x32xf32>,
    return
  }
  func.func @transform_0(%arg0: i32) -> (i32, i32) {
    %c0_i32 = arith.constant 0 : i32
    %c0_i32_0 = arith.constant 0 : i32
    return %arg0, %c0_i32 : i32, i32
  }
  func.func @transform_1(%arg0: i32) -> (i32, i32) {
    %c0_i32 = arith.constant 0 : i32
    %c0_i32_0 = arith.constant 0 : i32
    %c0_i32_1 = arith.constant 0 : i32
    return %c0_i32, %c0_i32_0 : i32, i32
  }
  func.func @transform_2(%arg0: i32) -> (i32, i32) {
    %c0_i32 = arith.constant 0 : i32
    %c0_i32_0 = arith.constant 0 : i32
    %c0_i32_1 = arith.constant 0 : i32
    return %c0_i32, %c0_i32_0 : i32, i32
  }
  func.func @transform_3(%arg0: i32) -> (i32, i32) {
    %c0_i32 = arith.constant 0 : i32
    %c0_i32_0 = arith.constant 0 : i32
    return %arg0, %c0_i32 : i32, i32
  }
}

</mosaic_0001>

<bundles_post_ra>
// kernel: base_action_forward.1
= control target key start
LH: loop header
LB: loop body
LE: loop exit
PB: predicated region body
PF: predicated region fallthrough
CT: control target
= control target key end

     0   :  { %v105_v1 = vmov 0   ;;  %v106_v2 = vmov 2   ;;  %s142_s0 = inlined_call_operand.vmem [shape: f32[8,4], index: 0, kind: input, shape index: {}]   ;;  %s143_s1 = inlined_call_operand.vmem [shape: f32[4,32], index: 1, kind: input, shape index: {}]   ;;  %s144_s2 = inlined_call_operand.vmem [shape: f32[1,32], index: 2, kind: input, shape index: {}]   ;;  %s145_s3 = inlined_call_operand.hbm [shape: f32[8,32], index: 3, kind: output, shape index: {}]  }
   0x1   :  { %v15_v0 = vld [vmem:[%s142_s0] sm:$0xff]  ;;  %73 = vset.pattern.permute.xlu0 %v105_v1  ;;  %75 = vset.pattern.permute.xlu1 %v106_v2 }
   0x2   :  { %8 = vsyncpa [#allocation3], 0  ;;  %20 = vperm.xlu0 %73, %v15_v0   ;;  %33 = vperm.xlu1 %75, %v15_v0   ;;  %v107_v3 = vmov 1   ;;  %v108_v4 = vmov 3   ;;  %v16_v7 = vld [vmem:[%s143_s1] sm:$0xf] }
   0x3   :  { %v23_v8 = vperm.slane %v16_v7, 0  ;;  %v29_v9 = vperm.slane %v16_v7, 1  ;;  %v36_v10 = vperm.slane %v16_v7, 2  ;;  %v43_v11 = vperm.slane %v16_v7, 3  ;;  %v78_v19 = vld [vmem:[%s144_s2] ss:$0 sm:$0xff] }
   0x4   :  { %s109_s17 = smov [#allocation2]   ;;  %s59_s20 = sshll.u32 %s145_s3, 4  ;;  %vm50_vm0 = vcmask 261120   ;;  %s60_s20 = int_to_ptr.hbm [resolvable:$true] %s59_s20 }
   0x5   :  { %s57_s18 = sshll.u32 %s109_s17, 4  ;;  %s58_s18 = int_to_ptr.vmem [resolvable:$true] %s57_s18 }
   0xa   :  { %74 = vset.pattern.permute.xlu0 %v107_v3  ;;  %76 = vset.pattern.permute.xlu1 %v108_v4 }
   0xb   :  { %26 = vperm.xlu0 %74, %v15_v0   ;;  %40 = vperm.xlu1 %76, %v15_v0  }
  0x13   :  { %77 = vset.pattern.permute.xlu0 %v108_v4 }
  0x74   :  { %v21_v5 = vpop.permute.xlu0 %20  ;;  %v34_v6 = vpop.permute.xlu1 %33 }
  0x75   :  { %v24_v14 = vmul.f32 %v23_v8, %v21_v5  ;;  %v37_v16 = vmul.f32 %v36_v10, %v34_v6 }
  0x7d   :  { %v27_v12 = vpop.permute.xlu0 %26  ;;  %v41_v13 = vpop.permute.xlu1 %40 }
  0x7e   :  { %v30_v15 = vmul.f32 %v29_v9, %v27_v12  ;;  %v44_v18 = vmul.f32 %v43_v11, %v41_v13 }
  0x80   :  { %v31_v17 = vadd.f32 %v30_v15, %v24_v14 }
  0x82   :  { %v38_v20 = vadd.f32 %v37_v16, %v31_v17 }
  0x84   :  { %v45_v21 = vadd.f32 %v44_v18, %v38_v20 }
  0x86   :  { %v49_v22 = vadd.f32 %v78_v19, %v45_v21 }
  0x88   :  { %51 = vst.msk [vmem:[#allocation2] sm:$0xff] %vm50_vm0, %v49_v22 }
  0x89   :  { %62 = dma.vmem_to_hbm [thread:$0]  %s58_s18, 128, %s60_s20, [#allocation3]  }
  0x8a   :  { %103 = dma.done.wait [#allocation3], 128  }
  0x8b   :  { %104 = vsyncadd [#allocation3], 4294967168 }
  0x8c   :  { %67 = vsyncpa [#allocation3], 1 }

</bundles_post_ra>
